<compile_context>
chip_gen: v7x
topology: tpu7x:2x2x1
jax: 0.10.0
libtpu: 0.0.40
codegen_flags: <defaults>
</compile_context>

<pallas_src>
import jax
import jax.numpy as jnp
from jax.experimental import pallas as pl
from jax.experimental.pallas import tpu as pltpu

NEGATIVE_SLOPE = 1.0  # matches `negative_slope = 1` in the reference module


def _linear_leaky_kernel(x_ref, wt_ref, o_ref):
    # x_ref: (M, K) VMEM, wt_ref: (K, N) VMEM (transposed once at module init,
    # so no transpose is materialized in the kernel or per forward call).
    # MXU matmul with f32 accumulation, optional leaky-relu epilogue on the VPU.
    v1 = jnp.dot(x_ref[...], wt_ref[...], preferred_element_type=jnp.float32)
    if NEGATIVE_SLOPE != 1.0:  # statically elided dead work when slope == 1
        v1 = jnp.where(v1 > 0, v1, v1 * NEGATIVE_SLOPE)
    o_ref[...] = v1.astype(o_ref.dtype)


def prepare_weight(weight, dtype=jnp.float32):
    """One-time weight prep (module-init analog, NOT in the forward path):
    transpose PyTorch nn.Linear layout (N_out, K) -> (K, N_out) so the kernel
    feeds the MXU a plain (M,K)@(K,N) operand pair with no in-kernel / per-call
    transpose."""
    return jnp.asarray(weight, dtype=dtype).T


def model_forward(x1, wt):
    """x1: (N, C, H, W).  wt: (K, N_out) pre-transposed weight (prepare_weight).

    Computes leaky_relu(linear(x1, W)) over the last dim in a single gridless
    Pallas kernel invocation (whole operands resident in VMEM).
    """
    n, c, h, w = x1.shape
    m = n * c * h
    k = w
    n_out = wt.shape[1]

    x_flat = x1.reshape(m, k)  # free contiguous reshape

    itemsize = jnp.dtype(x1.dtype).itemsize
    out = pl.pallas_call(
        _linear_leaky_kernel,
        out_shape=jax.ShapeDtypeStruct((m, n_out), x1.dtype),
        in_specs=[
            pl.BlockSpec(memory_space=pltpu.MemorySpace.VMEM),
            pl.BlockSpec(memory_space=pltpu.MemorySpace.VMEM),
        ],
        out_specs=pl.BlockSpec(memory_space=pltpu.MemorySpace.VMEM),
        cost_estimate=pl.CostEstimate(
            flops=2 * m * k * n_out,
            bytes_accessed=(m * k + k * n_out + m * n_out) * itemsize,
            transcendentals=0,
        ),
    )(x_flat, wt)

    return out.reshape(n, c, h, n_out)


if __name__ == "__main__":
    key = jax.random.PRNGKey(0)
    # Same shape as the reference script: (1, 3, 64, 64)
    x1 = jax.random.normal(key, (1, 3, 64, 64), dtype=jnp.float32)
    # TODO(synk): F.linear(weight=None) is invalid in PyTorch; identity weight
    #             on the feature dim is the deterministic stand-in used here.
    weight = jnp.eye(64, dtype=jnp.float32)

    # Weight prep hoisted out of the forward path (done once per module life).
    wt = prepare_weight(weight, x1.dtype)
    jax.block_until_ready(wt)

    fwd = jax.jit(model_forward)
    out = fwd(x1, wt)
    jax.block_until_ready(out)

    # Pure-JAX reference of the same semantics.
    v1 = jnp.einsum("nchw,kw->nchk", x1, weight)
    ref = jnp.where(v1 > 0, v1, v1 * NEGATIVE_SLOPE)
    assert out.shape == (1, 3, 64, 64)
    assert jnp.allclose(out, ref, atol=1e-5, rtol=1e-5)

    print("KERNEL_OK")
</pallas_src>

<mosaic_0001>
module attributes {stable_mosaic.version = 11 : i64} {
  func.func @_linear_leaky_kernel(%arg0: memref<192x64xf32, #tpu.memory_space<vmem>>, %arg1: memref<64x64xf32, #tpu.memory_space<vmem>>, %arg2: memref<192x64xf32, #tpu.memory_space<vmem>>) attributes {dimension_semantics = [], scalar_prefetch = 0 : i64, scratch_operands = 0 : i64, tpu.core_type = #tpu.core_type<tc>} {
    %c0 = arith.constant 0 : index
    %c0_0 = arith.constant 0 : index
    %0 = vector.load %arg0[%c0, %c0_0] : memref<192x64xf32, #tpu.memory_space<vmem>>, vector<192x64xf32>
    %c0_1 = arith.constant 0 : index
    %c0_2 = arith.constant 0 : index
    %1 = vector.load %arg1[%c0_1, %c0_2] : memref<64x64xf32, #tpu.memory_space<vmem>>, vector<64x64xf32>
    %cst = arith.constant dense<0.000000e+00> : vector<192x64xf32>
    %2 = tpu.matmul %0, %1, %cst {dimension_numbers = #tpu.dot_dimension_numbers<[1], [0], [0], [1], [0, 0, 1, 1], [], []>} : vector<192x64xf32>, vector<64x64xf32>, vector<192x64xf32> -> vector<192x64xf32>
    %c0_3 = arith.constant 0 : index
    %c0_4 = arith.constant 0 : index
    %3 = vector.load %arg2[%c0_3, %c0_4] : memref<192x64xf32, #tpu.memory_space<vmem>>, vector<192x64xf32>
    tpu.vector_store %arg2[%c0_3, %c0_4], %2 {strides = array<i32>} : memref<192x64xf32, #tpu.memory_space<vmem>>, vector<192x64xf32>,
    return
  }
}

</mosaic_0001>

<bundles_post_ra>
// kernel: model_forward.1
= control target key start
LH: loop header
LB: loop body
LE: loop exit
PB: predicated region body
PF: predicated region fallthrough
CT: control target
= control target key end

     0   :  { %7 = vsyncpa [#allocation3], 0  ;;  %s694_s0 = inlined_call_operand.hbm [shape: f32[192,64], index: 0, kind: input, shape index: {}]   ;;  %s695_s1 = inlined_call_operand.hbm [shape: f32[64,64], index: 1, kind: input, shape index: {}]   ;;  %s696_s2 = inlined_call_operand.hbm [shape: f32[192,64], index: 2, kind: output, shape index: {}]  }
   0x1   :  { %8 = vsyncpa [#allocation6], 0 }
   0x2   :  { %9 = vsyncpa [#allocation4], 0  ;;  %s581_s9 = smov [#allocation2]   ;;  %s509_s13 = scalar_lea.hbm %s694_s0, 3072 }
   0x3   :  { %s15_s10 = sshll.u32 %s581_s9, 4  ;;  %p510_p0 = scmp.ne.s32.totalorder %s694_s0, %s509_s13  ;;  %s16_s10 = int_to_ptr.vmem [resolvable:$true] %s15_s10 }
   0x4   :  { %p513_p1 = scmp.lt.u32.totalorder %s509_s13, %s694_s0 }
   0x6   :  { %p515_p2 = pnand %p513_p1, %p510_p0 }
   0x8   :  { %518 = shalt.err (!%p515_p2)
}
   0x9   :  { %s519_s18 = scalar_lea.vmem %s16_s10, 3072  ;;  %p524_p4 = scmp.lt.s32.totalorder %s16_s10, %s16_s10 }
   0xa   :  { %p520_p3 = scmp.ne.s32.totalorder %s16_s10, %s519_s18  ;;  %p525_p5 = scmp.lt.s32.totalorder %s519_s18, %s519_s18 }
   0xc   :  { %p526_p6 = por %p525_p5, %p524_p4 }
   0xe   :  { %p527_p7 = pnand %p526_p6, %p520_p3 }
  0x10   :  { %530 = shalt.err (!%p527_p7)
}
  0x11   :  { %s582_s19 = smov 128   ;;  %s583_s20 = smov 8  }
  0x12   :  { %21 = dma.hbm_to_vmem [thread:$0]  %s694_s0, 3072, %s16_s10, [#allocation3], %s582_s19, %s582_s19, %s583_s20  }
  0x13   :  { %s584_s23 = smov [#allocation5]   ;;  %s531_s27 = scalar_lea.hbm %s695_s1, 1024 }
  0x14   :  { %s27_s24 = sshll.u32 %s584_s23, 4  ;;  %p532_p8 = scmp.ne.s32.totalorder %s695_s1, %s531_s27  ;;  %s28_s24 = int_to_ptr.vmem [resolvable:$true] %s27_s24 }
  0x15   :  { %p535_p9 = scmp.lt.u32.totalorder %s531_s27, %s695_s1 }
  0x17   :  { %p537_p10 = pnand %p535_p9, %p532_p8 }
  0x19   :  { %540 = shalt.err (!%p537_p10)
}
  0x1a   :  { %s541_s4 = scalar_lea.vmem %s28_s24, 1024  ;;  %p546_p12 = scmp.lt.s32.totalorder %s28_s24, %s28_s24 }
  0x1b   :  { %p542_p11 = scmp.ne.s32.totalorder %s28_s24, %s541_s4  ;;  %p547_p13 = scmp.lt.s32.totalorder %s541_s4, %s541_s4 }
  0x1d   :  { %p548_p0 = por %p547_p13, %p546_p12 }
  0x1f   :  { %p549_p1 = pnand %p548_p0, %p542_p11 }
  0x21   :  { %552 = shalt.err (!%p549_p1)
}
  0x22   :  { %33 = dma.hbm_to_vmem [thread:$0]  %s695_s1, 1024, %s28_s24, [#allocation6], %s582_s19, %s582_s19, %s583_s20  }
  0x23   :  { %575 = dma.done.wait [#allocation3], 3072  }
  0x24   :  { %576 = vsyncadd [#allocation3], 4294964224 }
  0x25   :  { %577 = dma.done.wait [#allocation6], 1024  }
  0x26   :  { %578 = vsyncadd [#allocation6], 4294966272  ;;  %v64_v0 = vld [vmem:[#allocation5] sm:$0xff]  ;;  %v65_v1 = vld [vmem:[#allocation5 + $0x8] sm:$0xff]  ;;  %vm72_vm0 = vcmask 523264   ;;  %s585_s1 = smov [#allocation7]  }
  0x27   :  { %v66_v2 = vld [vmem:[#allocation5 + $0x10] sm:$0xff]  ;;  %v480_v3 = vpack.c.bf16 %v65_v1, %v64_v0  ;;  %v67_v4 = vld [vmem:[#allocation5 + $0x18] sm:$0xff]  ;;  %v68_v6 = vld [vmem:[#allocation5 + $0x20] sm:$0xff]  ;;  %s359_s6 = sshll.u32 %s585_s1, 4  ;;  %s360_s6 = int_to_ptr.vmem [resolvable:$true] %s359_s6 }
  0x28   :  { %v484_v5 = vpack.c.bf16 %v67_v4, %v66_v2  ;;  %v69_v7 = vld [vmem:[#allocation5 + $0x28] sm:$0xff]  ;;  %v40_v8 = vld [vmem:[#allocation2] sm:$0xff]  ;;  %v70_v11 = vld [vmem:[#allocation5 + $0x30] sm:$0xff]  ;;  %s553_s7 = scalar_lea.vmem %s360_s6, 3072  ;;  %p558_p3 = scmp.lt.s32.totalorder %s360_s6, %s360_s6 }
  0x29   :  { %481 = vmatprep.subr.bf16.mxu0 %v480_v3  ;;  %496 = vmatprep.subr.bf16.mxu1 %v480_v3  ;;  %v52_v9 = vld [vmem:[#allocation2 + $0x60] sm:$0xff]  ;;  %v488_v10 = vpack.c.bf16 %v69_v7, %v68_v6  ;;  %v71_v12 = vld [vmem:[#allocation5 + $0x38] sm:$0xff]  ;;  %v41_v14 = vld [vmem:[#allocation2 + $0x8] sm:$0xff]  ;;  %p554_p2 = scmp.ne.s32.totalorder %s360_s6, %s553_s7  ;;  %p559_p4 = scmp.lt.s32.totalorder %s553_s7, %s553_s7 }
  0x2a   :  { %483 = vmatpush3.bf16.msra.mxu0 %v480_v3  ;;  %500 = vmatpush3.bf16.msra.mxu1 %v480_v3  ;;  %v492_v13 = vpack.c.bf16 %v71_v12, %v70_v11  ;;  %v53_v15 = vld [vmem:[#allocation2 + $0x68] sm:$0xff]  ;;  %v42_v16 = vld [vmem:[#allocation2 + $0x10] sm:$0xff]  ;;  %v43_v18 = vld [vmem:[#allocation2 + $0x18] sm:$0xff] }
  0x2b   :  { %485 = vmatprep.subr.bf16.mxu0 %v484_v5  ;;  %497 = vmatprep.subr.bf16.mxu1 %v484_v5  ;;  %v54_v17 = vld [vmem:[#allocation2 + $0x70] sm:$0xff]  ;;  %v55_v19 = vld [vmem:[#allocation2 + $0x78] sm:$0xff]  ;;  %v44_v20 = vld [vmem:[#allocation2 + $0x20] sm:$0xff]  ;;  %p560_p5 = por %p559_p4, %p558_p3 }
  0x2c   :  { %444 = vmatprep.mubr.msk.f32.mxu0 %vm72_vm0, %v40_v8  ;;  %462 = vmatprep.mubr.msk.f32.mxu1 %vm72_vm0, %v52_v9  ;;  %v56_v21 = vld [vmem:[#allocation2 + $0x80] sm:$0xff]  ;;  %v45_v22 = vld [vmem:[#allocation2 + $0x28] sm:$0xff]  ;;  %v46_v24 = vld [vmem:[#allocation2 + $0x30] sm:$0xff] }
  0x2d   :  { %v57_v23 = vld [vmem:[#allocation2 + $0x88] sm:$0xff]  ;;  %v58_v25 = vld [vmem:[#allocation2 + $0x90] sm:$0xff]  ;;  %v47_v26 = vld [vmem:[#allocation2 + $0x38] sm:$0xff]  ;;  %p561_p6 = pnand %p560_p5, %p554_p2 }
  0x2e   :  { %487 = vmatpush3.bf16.msra.mxu0 %v484_v5  ;;  %501 = vmatpush3.bf16.msra.mxu1 %v484_v5  ;;  %v59_v27 = vld [vmem:[#allocation2 + $0x98] sm:$0xff]  ;;  %v48_v28 = vld [vmem:[#allocation2 + $0x40] sm:$0xff]  ;;  %v49_v30 = vld [vmem:[#allocation2 + $0x48] sm:$0xff] }
  0x2f   :  { %489 = vmatprep.subr.bf16.mxu0 %v488_v10  ;;  %498 = vmatprep.subr.bf16.mxu1 %v488_v10  ;;  %v60_v29 = vld [vmem:[#allocation2 + $0xa0] sm:$0xff]  ;;  %v61_v31 = vld [vmem:[#allocation2 + $0xa8] sm:$0xff]  ;;  %v50_v32 = vld [vmem:[#allocation2 + $0x50] sm:$0xff] }
  0x30   :  { %v62_v33 = vld [vmem:[#allocation2 + $0xb0] sm:$0xff]  ;;  %v51_v34 = vld [vmem:[#allocation2 + $0x58] sm:$0xff] }
  0x31   :  { %v63_v35 = vld [vmem:[#allocation2 + $0xb8] sm:$0xff] }
  0x32   :  { %491 = vmatpush3.bf16.msra.mxu0 %v488_v10  ;;  %502 = vmatpush3.bf16.msra.mxu1 %v488_v10 }
  0x33   :  { %493 = vmatprep.subr.bf16.mxu0 %v492_v13  ;;  %499 = vmatprep.subr.bf16.mxu1 %v492_v13 }
  0x36   :  { %495 = vmatpush3.bf16.msra.mxu0 %v492_v13  ;;  %503 = vmatpush3.bf16.msra.mxu1 %v492_v13 }
  0x39   :  { %445 = vmatmul.mubr.msk.f32.vlgmr.msra.gmra.mrb[0].mxu0 %vm72_vm0, %v41_v14  ;;  %463 = vmatmul.mubr.msk.f32.vlgmr.msra.gmra.mrb[0].mxu1 %vm72_vm0, %v53_v15 }
  0x3a   :  { %447 = vmatprep.mubr.msk.f32.mxu0 %vm72_vm0, %v42_v16  ;;  %465 = vmatprep.mubr.msk.f32.mxu1 %vm72_vm0, %v54_v17 }
  0x3d   :  { %448 = vmatmul.mubr.msk.f32.gmra.mrb[2].mxu0 %vm72_vm0, %v43_v18  ;;  %466 = vmatmul.mubr.msk.f32.gmra.mrb[2].mxu1 %vm72_vm0, %v55_v19 }
  0x3e   :  { %450 = vmatprep.mubr.msk.f32.mxu0 %vm72_vm0, %v44_v20  ;;  %468 = vmatprep.mubr.msk.f32.mxu1 %vm72_vm0, %v56_v21 }
  0x41   :  { %451 = vmatmul.mubr.msk.f32.gmra.mrb[4].mxu0 %vm72_vm0, %v45_v22  ;;  %469 = vmatmul.mubr.msk.f32.gmra.mrb[4].mxu1 %vm72_vm0, %v57_v23 }
  0x42   :  { %453 = vmatprep.mubr.msk.f32.mxu0 %vm72_vm0, %v46_v24  ;;  %471 = vmatprep.mubr.msk.f32.mxu1 %vm72_vm0, %v58_v25 }
  0x45   :  { %454 = vmatmul.mubr.msk.f32.gmra.mrb[6].mxu0 %vm72_vm0, %v47_v26  ;;  %472 = vmatmul.mubr.msk.f32.gmra.mrb[6].mxu1 %vm72_vm0, %v59_v27 }
  0x46   :  { %456 = vmatprep.mubr.msk.f32.mxu0 %vm72_vm0, %v48_v28  ;;  %474 = vmatprep.mubr.msk.f32.mxu1 %vm72_vm0, %v60_v29 }
  0x49   :  { %457 = vmatmul.mubr.msk.f32.gmra.mrb[8].mxu0 %vm72_vm0, %v49_v30  ;;  %475 = vmatmul.mubr.msk.f32.gmra.mrb[8].mxu1 %vm72_vm0, %v61_v31 }
  0x4a   :  { %459 = vmatprep.mubr.msk.f32.mxu0 %vm72_vm0, %v50_v32  ;;  %477 = vmatprep.mubr.msk.f32.mxu1 %vm72_vm0, %v62_v33 }
  0x4d   :  { %460 = vmatmul.mubr.msk.f32.gmra.mrb[10].mxu0 %vm72_vm0, %v51_v34  ;;  %478 = vmatmul.mubr.msk.f32.gmra.mrb[10].mxu1 %vm72_vm0, %v63_v35 }
 0x10c   :  { %v446_v36 = vpop.f32.mrb[0].mxu0  ;;  %v464_v37 = vpop.f32.mrb[0].mxu1 }
 0x10d   :  { %331 = vst.msk [vmem:[#allocation7 + $0x8] sm:$0xff] %vm72_vm0, %v446_v36  ;;  %343 = vst.msk [vmem:[#allocation7 + $0x68] sm:$0xff] %vm72_vm0, %v464_v37  ;;  %v211_v38 = vpop.f32.mrb[1].mxu0  ;;  %v271_v39 = vpop.f32.mrb[1].mxu1 }
 0x10e   :  { %330 = vst.msk [vmem:[#allocation7] sm:$0xff] %vm72_vm0, %v211_v38  ;;  %342 = vst.msk [vmem:[#allocation7 + $0x60] sm:$0xff] %vm72_vm0, %v271_v39 }
 0x110   :  { %v449_v40 = vpop.f32.mrb[2].mxu0  ;;  %v467_v41 = vpop.f32.mrb[2].mxu1 }
 0x111   :  { %333 = vst.msk [vmem:[#allocation7 + $0x18] sm:$0xff] %vm72_vm0, %v449_v40  ;;  %345 = vst.msk [vmem:[#allocation7 + $0x78] sm:$0xff] %vm72_vm0, %v467_v41  ;;  %v221_v42 = vpop.f32.mrb[3].mxu0  ;;  %v281_v43 = vpop.f32.mrb[3].mxu1 }
 0x112   :  { %332 = vst.msk [vmem:[#allocation7 + $0x10] sm:$0xff] %vm72_vm0, %v221_v42  ;;  %344 = vst.msk [vmem:[#allocation7 + $0x70] sm:$0xff] %vm72_vm0, %v281_v43 }
 0x114   :  { %v452_v44 = vpop.f32.mrb[4].mxu0  ;;  %v470_v45 = vpop.f32.mrb[4].mxu1 }
 0x115   :  { %335 = vst.msk [vmem:[#allocation7 + $0x28] sm:$0xff] %vm72_vm0, %v452_v44  ;;  %347 = vst.msk [vmem:[#allocation7 + $0x88] sm:$0xff] %vm72_vm0, %v470_v45  ;;  %v231_v46 = vpop.f32.mrb[5].mxu0  ;;  %v291_v47 = vpop.f32.mrb[5].mxu1 }
 0x116   :  { %334 = vst.msk [vmem:[#allocation7 + $0x20] sm:$0xff] %vm72_vm0, %v231_v46  ;;  %346 = vst.msk [vmem:[#allocation7 + $0x80] sm:$0xff] %vm72_vm0, %v291_v47 }
 0x118   :  { %v455_v48 = vpop.f32.mrb[6].mxu0  ;;  %v473_v49 = vpop.f32.mrb[6].mxu1 }
 0x119   :  { %337 = vst.msk [vmem:[#allocation7 + $0x38] sm:$0xff] %vm72_vm0, %v455_v48  ;;  %349 = vst.msk [vmem:[#allocation7 + $0x98] sm:$0xff] %vm72_vm0, %v473_v49  ;;  %v241_v50 = vpop.f32.mrb[7].mxu0  ;;  %v301_v51 = vpop.f32.mrb[7].mxu1 }
 0x11a   :  { %336 = vst.msk [vmem:[#allocation7 + $0x30] sm:$0xff] %vm72_vm0, %v241_v50  ;;  %348 = vst.msk [vmem:[#allocation7 + $0x90] sm:$0xff] %vm72_vm0, %v301_v51 }
 0x11c   :  { %v458_v52 = vpop.f32.mrb[8].mxu0  ;;  %v476_v53 = vpop.f32.mrb[8].mxu1 }
 0x11d   :  { %339 = vst.msk [vmem:[#allocation7 + $0x48] sm:$0xff] %vm72_vm0, %v458_v52  ;;  %351 = vst.msk [vmem:[#allocation7 + $0xa8] sm:$0xff] %vm72_vm0, %v476_v53  ;;  %v251_v54 = vpop.f32.mrb[9].mxu0  ;;  %v311_v55 = vpop.f32.mrb[9].mxu1 }
 0x11e   :  { %338 = vst.msk [vmem:[#allocation7 + $0x40] sm:$0xff] %vm72_vm0, %v251_v54  ;;  %350 = vst.msk [vmem:[#allocation7 + $0xa0] sm:$0xff] %vm72_vm0, %v311_v55 }
 0x120   :  { %v461_v56 = vpop.f32.mrb[10].mxu0  ;;  %v479_v57 = vpop.f32.mrb[10].mxu1 }
 0x121   :  { %341 = vst.msk [vmem:[#allocation7 + $0x58] sm:$0xff] %vm72_vm0, %v461_v56  ;;  %353 = vst.msk [vmem:[#allocation7 + $0xb8] sm:$0xff] %vm72_vm0, %v479_v57  ;;  %v261_v58 = vpop.f32.mrb[11].mxu0  ;;  %v321_v59 = vpop.f32.mrb[11].mxu1 }
 0x122   :  { %340 = vst.msk [vmem:[#allocation7 + $0x50] sm:$0xff] %vm72_vm0, %v261_v58  ;;  %352 = vst.msk [vmem:[#allocation7 + $0xb0] sm:$0xff] %vm72_vm0, %v321_v59 }
 0x123   :  { %564 = shalt.err (!%p561_p6)
}
 0x124   :  { %s565_s10 = scalar_lea.hbm %s696_s2, 3072 }
 0x125   :  { %p566_p7 = scmp.ne.s32.totalorder %s696_s2, %s565_s10  ;;  %p569_p8 = scmp.lt.u32.totalorder %s565_s10, %s696_s2 }
 0x127   :  { %p571_p9 = pnand %p569_p8, %p566_p7 }
 0x129   :  { %574 = shalt.err (!%p571_p9)
}
 0x12a   :  { %365 = dma.vmem_to_hbm [thread:$0]  %s360_s6, 3072, %s696_s2, [#allocation4], %s582_s19, %s582_s19, %s583_s20  }
 0x12b   :  { %579 = dma.done.wait [#allocation4], 3072  }
 0x12c   :  { %580 = vsyncadd [#allocation4], 4294964224 }
 0x12d   :  { %369 = vsyncpa [#allocation3], 1 }
 0x12e   :  { %370 = vsyncpa [#allocation6], 1 }
 0x12f   :  { %371 = vsyncpa [#allocation4], 1 }

</bundles_post_ra>
